<compile_context>
chip_gen: v5e
topology: v5e:2x2
jax: 0.10.0
libtpu: 0.0.40
codegen_flags: <defaults>
</compile_context>

<pallas_src>
import jax
import jax.numpy as jnp
from jax.experimental import pallas as pl
from jax.experimental.pallas import tpu as pltpu

_TILE_BYTES = 2 << 20  # ~2 MiB per x/out tile


def _round_down_mult(n, m):
    return max(m, (n // m) * m)


# ----------------------------- kernels ------------------------------------


def _add_flat_kernel(x_ref, pos_ref, o_ref):
    # x_ref: (TB, S*D), pos_ref: (1, S*D)  -> lane-dense broadcast add.
    o_ref[...] = (x_ref[...] + pos_ref[...]).astype(o_ref.dtype)


def _add_3d_kernel(x_ref, pos_ref, o_ref):
    # x_ref: (TB, TS, D), pos_ref: (TS, D)
    o_ref[...] = (x_ref[...] + pos_ref[...][None, :, :]).astype(o_ref.dtype)


# ----------------------------- wrappers ------------------------------------


def _cost(B, S, D, x_dtype, e_dtype):
    xb = jnp.dtype(x_dtype).itemsize
    eb = jnp.dtype(e_dtype).itemsize
    return pl.CostEstimate(
        flops=B * S * D,
        transcendentals=0,
        bytes_accessed=2 * B * S * D * xb + S * D * eb,
    )


def _pos_enc_tiled_3d(x, emb_s, cost):
    """d_model % 128 == 0: lane-dense 3-D row tiling over (batch, seq)."""
    B, S, D = x.shape
    elem_budget = max(1, _TILE_BYTES // x.dtype.itemsize)
    if S * D <= elem_budget:
        ts = S  # full seq extent per block (always legal: equals array dim)
    else:
        ts = min(S, _round_down_mult(elem_budget // D, 8))  # multiple of 8
    tb = max(1, min(B, elem_budget // (ts * D)))
    grid = (pl.cdiv(B, tb), pl.cdiv(S, ts))

    return pl.pallas_call(
        _add_3d_kernel,
        out_shape=jax.ShapeDtypeStruct((B, S, D), x.dtype),
        grid_spec=pltpu.PrefetchScalarGridSpec(
            num_scalar_prefetch=0,
            grid=grid,
            in_specs=[
                pl.BlockSpec((tb, ts, D), lambda b, s: (b, s, 0)),
                pl.BlockSpec((ts, D), lambda b, s: (s, 0)),
            ],
            out_specs=pl.BlockSpec((tb, ts, D), lambda b, s: (b, s, 0)),
        ),
        compiler_params=pltpu.CompilerParams(
            dimension_semantics=("parallel", "parallel")),
        cost_estimate=cost,
    )(x, emb_s)


def _pos_enc_lane_folded(x, emb_s, cost):
    """d_model < 128 but (S*D) % 128 == 0: fold d_model into the lane axis."""
    B, S, D = x.shape
    n = S * D
    x2 = x.reshape(B, n)        # free row-major view
    emb2 = emb_s.reshape(1, n)  # free row-major view

    tb_budget = max(1, _TILE_BYTES // (n * x.dtype.itemsize))
    tb = B if tb_budget >= B else _round_down_mult(tb_budget, 8)
    grid = (pl.cdiv(B, tb),)

    out2 = pl.pallas_call(
        _add_flat_kernel,
        out_shape=jax.ShapeDtypeStruct((B, n), x.dtype),
        grid_spec=pltpu.PrefetchScalarGridSpec(
            num_scalar_prefetch=0,
            grid=grid,
            in_specs=[
                pl.BlockSpec((tb, n), lambda i: (i, 0)),
                pl.BlockSpec((1, n), lambda i: (0, 0)),
            ],
            out_specs=pl.BlockSpec((tb, n), lambda i: (i, 0)),
        ),
        compiler_params=pltpu.CompilerParams(dimension_semantics=("parallel",)),
        cost_estimate=cost,
    )(x2, emb2)
    return out2.reshape(B, S, D)


def _pos_enc_batch_tiled(x, emb_s, cost):
    """Any shape: blocks of (TB, S, D); last two dims are full extents (legal)."""
    # TODO(synk): if a single (S, D) slab itself exceeds the VMEM budget with an
    # unaligned D, the input should be padded to a lane-dense layout instead.
    B, S, D = x.shape
    elem_budget = max(1, _TILE_BYTES // x.dtype.itemsize)
    tb = max(1, min(B, elem_budget // (S * D)))
    grid = (pl.cdiv(B, tb),)

    return pl.pallas_call(
        _add_3d_kernel,
        out_shape=jax.ShapeDtypeStruct((B, S, D), x.dtype),
        grid_spec=pltpu.PrefetchScalarGridSpec(
            num_scalar_prefetch=0,
            grid=grid,
            in_specs=[
                pl.BlockSpec((tb, S, D), lambda b: (b, 0, 0)),
                pl.BlockSpec((S, D), lambda b: (0, 0)),
            ],
            out_specs=pl.BlockSpec((tb, S, D), lambda b: (b, 0, 0)),
        ),
        compiler_params=pltpu.CompilerParams(dimension_semantics=("parallel",)),
        cost_estimate=cost,
    )(x, emb_s)


def positional_encoding(x: jax.Array, emb_table: jax.Array) -> jax.Array:
    """x: [B, S, D] (batched) or [S, D]; emb_table: [num_positions, D], S <= num_positions."""
    squeeze = x.ndim == 2
    if squeeze:
        x = x[None]
    B, S, D = x.shape
    P, De = emb_table.shape
    assert De == D and S <= P, "seq_len must be <= num_positions and dims must match"

    # Tiny slice (S*D elements) of the table; dominant traffic is x/out anyway.
    emb_s = emb_table if S == P else emb_table[:S]

    cost = _cost(B, S, D, x.dtype, emb_table.dtype)
    if D % 128 == 0:
        out = _pos_enc_tiled_3d(x, emb_s, cost)
    elif (S * D) % 128 == 0:
        out = _pos_enc_lane_folded(x, emb_s, cost)
    else:
        out = _pos_enc_batch_tiled(x, emb_s, cost)
    return out[0] if squeeze else out


if __name__ == "__main__":
    key = jax.random.PRNGKey(0)
    k_x, k_emb, k_x2, k_emb2, k_x3, k_emb3 = jax.random.split(key, 6)

    # Module hyperparameters: d_model=32, num_positions=20, batched=True
    d_model, num_positions, batch, seq_len = 32, 20, 2, 8
    emb_table = jax.random.normal(k_emb, (num_positions, d_model), dtype=jnp.float32)
    x = jax.random.normal(k_x, (batch, seq_len, d_model), dtype=jnp.float32)

    out = jax.block_until_ready(positional_encoding(x, emb_table))
    ref = x + emb_table[:seq_len][None, :, :]
    assert out.shape == x.shape
    assert jnp.allclose(out, ref, atol=1e-6), "mismatch (lane-folded path)"

    # Non-batched call (batched=False semantics): x is [seq_len, d_model]
    x_nb = x[0]
    out_nb = jax.block_until_ready(positional_encoding(x_nb, emb_table))
    assert jnp.allclose(out_nb, x_nb + emb_table[:seq_len], atol=1e-6), "mismatch (unbatched)"

    # Lane-aligned path (d_model % 128 == 0)
    emb_b = jax.random.normal(k_emb2, (24, 128), dtype=jnp.float32)
    x_b = jax.random.normal(k_x2, (2, 16, 128), dtype=jnp.float32)
    out_b = jax.block_until_ready(positional_encoding(x_b, emb_b))
    assert jnp.allclose(out_b, x_b + emb_b[:16][None], atol=1e-6), "mismatch (3-D tiled path)"

    # Fallback path (nothing divides nicely)
    emb_c = jax.random.normal(k_emb3, (20, 48), dtype=jnp.float32)
    x_c = jax.random.normal(k_x3, (2, 5, 48), dtype=jnp.float32)
    out_c = jax.block_until_ready(positional_encoding(x_c, emb_c))
    assert jnp.allclose(out_c, x_c + emb_c[:5][None], atol=1e-6), "mismatch (fallback path)"

    print("KERNEL_OK")
</pallas_src>

<mosaic_0001>
module attributes {stable_mosaic.version = 11 : i64} {
  func.func @_add_flat_kernel(%arg0: i32, %arg1: memref<2x256xf32, #tpu.memory_space<vmem>>, %arg2: memref<1x256xf32, #tpu.memory_space<vmem>>, %arg3: memref<2x256xf32, #tpu.memory_space<vmem>>) attributes {dimension_semantics = [#tpu.dimension_semantics<parallel>], iteration_bounds = array<i64: 1>, scalar_prefetch = 0 : i64, scratch_operands = 0 : i64, tpu.core_type = #tpu.core_type<tc>, window_params = [{transform_indices = @transform_0, window_bounds = array<i64: 2, 256>}, {pipeline_mode = #tpu.pipeline_mode<synchronous>, transform_indices = @transform_1, window_bounds = array<i64: 1, 256>}, {transform_indices = @transform_2, window_bounds = array<i64: 2, 256>}]} {
    %c0 = arith.constant 0 : index
    %c0_0 = arith.constant 0 : index
    %0 = vector.load %arg1[%c0, %c0_0] : memref<2x256xf32, #tpu.memory_space<vmem>>, vector<2x256xf32>
    %c0_1 = arith.constant 0 : index
    %c0_2 = arith.constant 0 : index
    %1 = vector.load %arg2[%c0_1, %c0_2] : memref<1x256xf32, #tpu.memory_space<vmem>>, vector<1x256xf32>
    %2 = vector.broadcast %1 : vector<1x256xf32> to vector<2x256xf32>
    %3 = arith.addf %0, %2 : vector<2x256xf32>
    %c0_3 = arith.constant 0 : index
    %c0_4 = arith.constant 0 : index
    %4 = vector.load %arg3[%c0_3, %c0_4] : memref<2x256xf32, #tpu.memory_space<vmem>>, vector<2x256xf32>
    tpu.vector_store %arg3[%c0_3, %c0_4], %3 {strides = array<i32>} : memref<2x256xf32, #tpu.memory_space<vmem>>, vector<2x256xf32>,
    return
  }
  func.func @transform_0(%arg0: i32) -> (i32, i32) {
    %c0_i32 = arith.constant 0 : i32
    %c0_i32_0 = arith.constant 0 : i32
    return %arg0, %c0_i32 : i32, i32
  }
  func.func @transform_1(%arg0: i32) -> (i32, i32) {
    %c0_i32 = arith.constant 0 : i32
    %c0_i32_0 = arith.constant 0 : i32
    %c0_i32_1 = arith.constant 0 : i32
    return %c0_i32, %c0_i32_0 : i32, i32
  }
  func.func @transform_2(%arg0: i32) -> (i32, i32) {
    %c0_i32 = arith.constant 0 : i32
    %c0_i32_0 = arith.constant 0 : i32
    return %arg0, %c0_i32 : i32, i32
  }
}

</mosaic_0001>

<bundles_post_ra>
// kernel: tpu_custom_call.1
= control target key start
LH: loop header
LB: loop body
LE: loop exit
PB: predicated region body
PF: predicated region fallthrough
CT: control target
= control target key end

     0   :  { %7 = vsyncpa [#allocation3], 0  ;;  %s177_s0 = inlined_call_operand.hbm [shape: f32[2,256], index: 0, kind: input, shape index: {}]   ;;  %s178_s1 = inlined_call_operand.hbm [shape: f32[1,256], index: 1, kind: input, shape index: {}]   ;;  %s179_s2 = inlined_call_operand.hbm [shape: f32[2,256], index: 2, kind: output, shape index: {}]  }
   0x1   :  { %8 = vsyncpa [#allocation6], 0 }
   0x2   :  { %9 = vsyncpa [#allocation4], 0  ;;  %s15_s11 = sshll.u32 %s177_s0, 4  ;;  %s150_s12 = smov [#allocation2]   ;;  %s16_s11 = int_to_ptr.hbm [resolvable:$true] %s15_s11 }
   0x3   :  { %s17_s13 = sshll.u32 %s150_s12, 4  ;;  %s26_s16 = sshll.u32 %s178_s1, 4  ;;  %s18_s13 = int_to_ptr.vmem [resolvable:$true] %s17_s13  ;;  %s27_s16 = int_to_ptr.hbm [resolvable:$true] %s26_s16 }
   0x4   :  { %20 = dma.hbm_to_vmem [thread:$0]  %s16_s11, 64, %s18_s13, [#allocation3]  }
   0x5   :  { %s151_s17 = smov [#allocation5]  }
   0x6   :  { %s28_s18 = sshll.u32 %s151_s17, 4  ;;  %s29_s18 = int_to_ptr.vmem [resolvable:$true] %s28_s18 }
   0x7   :  { %31 = dma.hbm_to_vmem [thread:$0]  %s27_s16, 32, %s29_s18, [#allocation6]  }
   0x8   :  { %144 = dma.done.wait [#allocation3], 64  }
   0x9   :  { %145 = vsyncadd [#allocation3], 4294967232 }
   0xa   :  { %146 = dma.done.wait [#allocation6], 32  }
   0xb   :  { %147 = vsyncadd [#allocation6], 4294967264  ;;  %v41_v0 = vld [vmem:[#allocation5] sm:$0x3]  ;;  %vm46_vm0 = vcmask 1041408   ;;  %s152_s0 = smov [#allocation7]  }
   0xc   :  { %v43_v1 = vperm.slane %v41_v0, 0  ;;  %v44_v2 = vperm.slane %v41_v0, 1  ;;  %v40_v3 = vld [vmem:[#allocation2] sm:$0xf]  ;;  %s56_s19 = sshll.u32 %s152_s0, 4  ;;  %s58_s21 = sshll.u32 %s179_s2, 4  ;;  %s57_s19 = int_to_ptr.vmem [resolvable:$true] %s56_s19  ;;  %s59_s21 = int_to_ptr.hbm [resolvable:$true] %s58_s21 }
   0xe   :  { %v45_v4 = vrot.slane %v44_v2, 6 }
  0x10   :  { %v47_v5 = vsel %vm46_vm0, %v43_v1, %v45_v4 }
  0x11   :  { %v49_v6 = vadd.f32 %v47_v5, %v40_v3 }
  0x13   :  { %50 = vst [vmem:[#allocation7] sm:$0xf] %v49_v6 }
  0x14   :  { %61 = dma.vmem_to_hbm [thread:$0]  %s57_s19, 64, %s59_s21, [#allocation4]  }
  0x15   :  { %148 = dma.done.wait [#allocation4], 64  }
  0x16   :  { %149 = vsyncadd [#allocation4], 4294967232 }
  0x17   :  { %66 = vsyncpa [#allocation3], 1 }
  0x18   :  { %67 = vsyncpa [#allocation6], 1 }
  0x19   :  { %68 = vsyncpa [#allocation4], 1 }

</bundles_post_ra>
